<compile_context>
chip_gen: v7x
topology: tpu7x:2x2x1
jax: 0.10.0
libtpu: 0.0.40
codegen_flags: <defaults>
</compile_context>

<pallas_src>
import functools

import jax
import jax.numpy as jnp
from jax import lax
from jax.experimental import pallas as pl
from jax.experimental.pallas import tpu as pltpu


def _round_up(a, b):
    return ((a + b - 1) // b) * b


def _sublane_multiple(dtype):
    # Minimum row multiple for a packed vreg: 8 for 4-byte, 16 for bf16, 32 for int8/fp8.
    return max(8, 32 // jnp.dtype(dtype).itemsize)


def _vmem_budget_bytes():
    cap = 64 << 20  # conservative default = v7x per-TensorCore VMEM
    try:
        info = pltpu.get_tpu_info()
        cap = int(getattr(info, "vmem_capacity_bytes", cap)) or cap
    except Exception:
        pass
    # Leave headroom for Mosaic-internal scratch; never ask beyond ~96 MiB.
    return min(int(cap * 0.7), 96 << 20)


# ------------------------------- kernels ------------------------------------

def _query_direct_kernel(x_ref, w_ref, o_ref):
    # x_ref: (tm, K) rows of the flattened input
    # w_ref: (N, K)  weight in PyTorch (dim_attn, dim_input) layout
    # o_ref: (tm, N)
    # x @ w.T without materializing a transpose: contract both operands on axis 1.
    o_ref[...] = lax.dot_general(
        x_ref[...], w_ref[...],
        dimension_numbers=(((1,), (1,)), ((), ())),
        preferred_element_type=jnp.float32,
    ).astype(o_ref.dtype)


def _query_acc_kernel(x_ref, w_ref, o_ref, acc_ref):
    # K-tiled variant: f32 accumulator resident across the K grid axis.
    kk = pl.program_id(2)

    @pl.when(kk == 0)
    def _():
        acc_ref[...] = jnp.zeros_like(acc_ref)

    acc_ref[...] += lax.dot_general(
        x_ref[...], w_ref[...],
        dimension_numbers=(((1,), (1,)), ((), ())),
        preferred_element_type=jnp.float32,
    )

    @pl.when(kk == pl.num_programs(2) - 1)
    def _():
        o_ref[...] = acc_ref[...].astype(o_ref.dtype)


# ------------------------------- wrapper ------------------------------------

def _query_forward_impl(x, weight, *, compute_dtype="auto",
                        tm=None, tn=None, tk=None):
    *lead, k = x.shape
    n, k_w = weight.shape
    assert k == k_w, "dim_input mismatch"

    m = 1
    for d in lead:
        m *= d

    out_dtype = x.dtype

    # bf16 is the MXU-native fast path (accumulation stays f32).
    # compute_dtype=jnp.float32 (or None) keeps the module's f32 numerics exactly.
    if compute_dtype == "auto":
        compute_dtype = jnp.bfloat16 if x.dtype == jnp.float32 else x.dtype
    elif compute_dtype is None:
        compute_dtype = x.dtype

    x2d = x.reshape(m, k).astype(compute_dtype)
    w = weight.astype(compute_dtype)

    in_item = jnp.dtype(compute_dtype).itemsize
    out_item = jnp.dtype(out_dtype).itemsize
    sub = _sublane_multiple(compute_dtype)
    budget = _vmem_budget_bytes()

    cost = pl.CostEstimate(
        flops=2 * m * k * n,
        transcendentals=0,
        bytes_accessed=(m * k + n * k) * in_item + m * n * out_item,
    )

    # ---------------- Weight-resident fast path -----------------------------
    # Typical Query projections fit the whole weight in VMEM on every
    # generation: 1-D grid over M, constant weight block (fetched once),
    # no reduction axis, no accumulator, no padding, no output slicing.
    w_bytes = n * k * in_item

    def _resident_fits(tm_):
        # Weight counted double-buffered to stay conservative.
        return (2 * w_bytes
                + 2 * tm_ * k * in_item
                + 2 * tm_ * n * out_item
                + (2 << 20)) <= budget

    if _resident_fits(sub):
        tm_cap = tm if tm is not None else (1024 if in_item <= 2 else 512)
        tm_cap = max(sub, tm_cap)
        tm_eff = tm_cap
        while tm_eff > sub and not _resident_fits(tm_eff):
            tm_eff = max(sub, tm_eff // 2)
        if m <= tm_eff:
            tm_eff = m                      # full-M block: legal for any m
        else:
            tm_eff = max(sub, (tm_eff // sub) * sub)
        gm = pl.cdiv(m, tm_eff)

        needed = 2 * w_bytes + 2 * tm_eff * (k * in_item + n * out_item)
        vmem_limit = min(budget, max(needed + (4 << 20), 32 << 20))

        out = pl.pallas_call(
            _query_direct_kernel,
            out_shape=jax.ShapeDtypeStruct((m, n), out_dtype),
            grid_spec=pltpu.PrefetchScalarGridSpec(
                num_scalar_prefetch=0,
                grid=(gm,),
                in_specs=[
                    pl.BlockSpec((tm_eff, k), lambda i: (i, 0)),
                    pl.BlockSpec((n, k), lambda i: (0, 0)),   # resident weight
                ],
                out_specs=pl.BlockSpec((tm_eff, n), lambda i: (i, 0)),
            ),
            compiler_params=pltpu.CompilerParams(
                dimension_semantics=("parallel",),
                vmem_limit_bytes=vmem_limit,
            ),
            cost_estimate=cost,
        )(x2d, w)
        return out.reshape(*lead, n)

    # ---------------- Tiled fallback (weight too large for VMEM) ------------
    if tm is None:
        tm = 1024 if in_item <= 2 else 512
    if tn is None:
        tn = 1024 if in_item <= 2 else 512
    if tk is None:
        tk = 512
    tm = max(sub, (tm // sub) * sub)
    tn = max(128, (tn // 128) * 128)
    tk = max(128, (tk // 128) * 128)

    tm_eff = m if m <= tm else tm
    tn_eff = n if n <= tn else tn
    tk_eff = k if k <= tk else tk
    gk = pl.cdiv(k, tk_eff)

    def _needed(tm_, tn_, tk_):
        return (2 * (tm_ * tk_ + tn_ * tk_) * in_item
                + 2 * tm_ * tn_ * out_item
                + (tm_ * tn_ * 4 if gk > 1 else 0))

    # Shrink M/N tiles if an override blew the VMEM budget.
    while _needed(tm_eff, tn_eff, tk_eff) + (2 << 20) > budget and (
            tn_eff > 128 or tm_eff > sub):
        if tn_eff > 128:
            tn_eff = max(128, tn_eff // 2)
        else:
            tm_eff = max(sub, tm_eff // 2)

    # M/N boundary blocks are handled as partial blocks (OOB writes dropped),
    # so no padding there.  Only a partial K tile would corrupt valid outputs,
    # so zero-pad K in the (rare) unaligned case.
    kp = gk * tk_eff
    if kp != k:
        x2d = jnp.pad(x2d, ((0, 0), (0, kp - k)))
        w = jnp.pad(w, ((0, 0), (0, kp - k)))

    gm = pl.cdiv(m, tm_eff)
    gn = pl.cdiv(n, tn_eff)
    vmem_limit = min(budget, max(_needed(tm_eff, tn_eff, tk_eff) + (4 << 20),
                                 32 << 20))

    if gk == 1:
        # No K reduction: write the dot straight to the output block.
        out = pl.pallas_call(
            _query_direct_kernel,
            out_shape=jax.ShapeDtypeStruct((m, n), out_dtype),
            grid_spec=pltpu.PrefetchScalarGridSpec(
                num_scalar_prefetch=0,
                grid=(gm, gn),
                in_specs=[
                    pl.BlockSpec((tm_eff, tk_eff), lambda i, j: (i, 0)),
                    pl.BlockSpec((tn_eff, tk_eff), lambda i, j: (j, 0)),
                ],
                out_specs=pl.BlockSpec((tm_eff, tn_eff), lambda i, j: (i, j)),
            ),
            compiler_params=pltpu.CompilerParams(
                dimension_semantics=("parallel", "parallel"),
                vmem_limit_bytes=vmem_limit,
            ),
            cost_estimate=cost,
        )(x2d, w)
    else:
        out = pl.pallas_call(
            _query_acc_kernel,
            out_shape=jax.ShapeDtypeStruct((m, n), out_dtype),
            grid_spec=pltpu.PrefetchScalarGridSpec(
                num_scalar_prefetch=0,
                grid=(gm, gn, gk),
                in_specs=[
                    pl.BlockSpec((tm_eff, tk_eff), lambda i, j, kk: (i, kk)),
                    pl.BlockSpec((tn_eff, tk_eff), lambda i, j, kk: (j, kk)),
                ],
                out_specs=pl.BlockSpec((tm_eff, tn_eff), lambda i, j, kk: (i, j)),
                scratch_shapes=[pltpu.VMEM((tm_eff, tn_eff), jnp.float32)],
            ),
            compiler_params=pltpu.CompilerParams(
                dimension_semantics=("parallel", "parallel", "arbitrary"),
                vmem_limit_bytes=vmem_limit,
            ),
            cost_estimate=cost,
        )(x2d, w)

    return out.reshape(*lead, n)


@functools.partial(jax.jit, static_argnames=("compute_dtype", "tm", "tn", "tk"))
def query_forward(x, weight, *, compute_dtype="auto", tm=None, tn=None, tk=None):
    """Compute x @ weight.T (PyTorch nn.Linear, bias=False) with a Pallas TPU kernel.

    x:       [..., dim_input]
    weight:  [dim_attn, dim_input]  (PyTorch layout, NOT transposed)
    compute_dtype: "auto" (default) -> bf16 MXU inputs with f32 accumulation;
                   jnp.float32 / None -> keep the input dtype (exact numerics).
    """
    return _query_forward_impl(x, weight, compute_dtype=compute_dtype,
                               tm=tm, tn=tn, tk=tk)


if __name__ == "__main__":
    # Small shapes implied by the module: x: [batch, seq, dim_input].
    batch, seq, dim_input, dim_attn = 2, 8, 32, 32

    key = jax.random.PRNGKey(0)
    kx, kw = jax.random.split(key)
    x = jax.random.normal(kx, (batch, seq, dim_input), dtype=jnp.float32)
    # Deterministic synthetic weight (PyTorch layout: [dim_attn, dim_input]).
    bound = 1.0 / (dim_input ** 0.5)
    weight = jax.random.uniform(
        kw, (dim_attn, dim_input), minval=-bound, maxval=bound,
        dtype=jnp.float32,
    )

    # Full-precision reference.
    y_ref = jnp.einsum("bsk,nk->bsn", x, weight,
                       precision=jax.lax.Precision.HIGHEST)

    # Default fast path: bf16 MXU inputs, f32 accumulation.
    y = query_forward(x, weight)
    jax.block_until_ready(y)
    assert y.shape == (batch, seq, dim_attn)
    assert y.dtype == x.dtype
    assert jnp.allclose(y, y_ref, atol=5e-2, rtol=5e-2), "bf16 fast path mismatch"

    # Exact-numerics path (matches the PyTorch module's f32 Linear).
    y_exact = query_forward(x, weight, compute_dtype=jnp.float32)
    jax.block_until_ready(y_exact)
    assert jnp.allclose(y_exact, y_ref, atol=1e-5, rtol=1e-5), "f32 path mismatch"

    print("KERNEL_OK")
</pallas_src>

<mosaic_0001>
module attributes {stable_mosaic.version = 11 : i64} {
  func.func @_query_direct_kernel(%arg0: i32, %arg1: memref<16x32xbf16, #tpu.memory_space<vmem>>, %arg2: memref<32x32xbf16, #tpu.memory_space<vmem>>, %arg3: memref<16x32xf32, #tpu.memory_space<vmem>>) attributes {dimension_semantics = [#tpu.dimension_semantics<parallel>], iteration_bounds = array<i64: 1>, scalar_prefetch = 0 : i64, scratch_operands = 0 : i64, tpu.core_type = #tpu.core_type<tc>, window_params = [{transform_indices = @transform_0, window_bounds = array<i64: 16, 32>}, {pipeline_mode = #tpu.pipeline_mode<synchronous>, transform_indices = @transform_1, window_bounds = array<i64: 32, 32>}, {transform_indices = @transform_2, window_bounds = array<i64: 16, 32>}]} {
    %c0 = arith.constant 0 : index
    %c0_0 = arith.constant 0 : index
    %0 = vector.load %arg1[%c0, %c0_0] : memref<16x32xbf16, #tpu.memory_space<vmem>>, vector<16x32xbf16>
    %c0_1 = arith.constant 0 : index
    %c0_2 = arith.constant 0 : index
    %1 = vector.load %arg2[%c0_1, %c0_2] : memref<32x32xbf16, #tpu.memory_space<vmem>>, vector<32x32xbf16>
    %cst = arith.constant dense<0.000000e+00> : vector<16x32xf32>
    %2 = tpu.matmul %0, %1, %cst {dimension_numbers = #tpu.dot_dimension_numbers<[1], [1], [0], [0], [0, 0, 1, 0], [], []>} : vector<16x32xbf16>, vector<32x32xbf16>, vector<16x32xf32> -> vector<16x32xf32>
    %c0_3 = arith.constant 0 : index
    %c0_4 = arith.constant 0 : index
    %3 = vector.load %arg3[%c0_3, %c0_4] : memref<16x32xf32, #tpu.memory_space<vmem>>, vector<16x32xf32>
    tpu.vector_store %arg3[%c0_3, %c0_4], %2 {strides = array<i32>} : memref<16x32xf32, #tpu.memory_space<vmem>>, vector<16x32xf32>,
    return
  }
  func.func @transform_0(%arg0: i32) -> (i32, i32) {
    %c0_i32 = arith.constant 0 : i32
    %c0_i32_0 = arith.constant 0 : i32
    return %arg0, %c0_i32 : i32, i32
  }
  func.func @transform_1(%arg0: i32) -> (i32, i32) {
    %c0_i32 = arith.constant 0 : i32
    %c0_i32_0 = arith.constant 0 : i32
    %c0_i32_1 = arith.constant 0 : i32
    return %c0_i32, %c0_i32_0 : i32, i32
  }
  func.func @transform_2(%arg0: i32) -> (i32, i32) {
    %c0_i32 = arith.constant 0 : i32
    %c0_i32_0 = arith.constant 0 : i32
    return %arg0, %c0_i32 : i32, i32
  }
}

</mosaic_0001>

<bundles_post_ra>
// kernel: query_forward.1
= control target key start
LH: loop header
LB: loop body
LE: loop exit
PB: predicated region body
PF: predicated region fallthrough
CT: control target
= control target key end

     0   :  { %v150_v1 = vmov 0.0   ;;  %vm34_vm0 = vcmask 261120   ;;  %vm151_vm1 = vmmov 0   ;;  %s196_s0 = inlined_call_operand.vmem [shape: bf16[16,32], index: 0, kind: input, shape index: {}]   ;;  %s197_s1 = inlined_call_operand.vmem [shape: bf16[32,32], index: 1, kind: input, shape index: {}]   ;;  %s198_s2 = inlined_call_operand.hbm [shape: f32[16,32], index: 2, kind: output, shape index: {}]  }
   0x1   :  { %v123_v0 = vld [vmem:[%s197_s1] sm:$0xff]   ;;  %110 = vmatprep.subr.bf16.mxu0 %v150_v1  ;;  %114 = vmatprep.mubr.msk.bf16.mxu0 %vm151_vm1, %v150_v1 }
   0x2   :  { %v39_v2 = vsel %vm34_vm0, %v123_v0, 0 }
   0x3   :  { %111 = vmatpush3.bf16.xpose.msra.mxu0 %v39_v2 }
   0x4   :  { %7 = vsyncpa [#allocation3], 0  ;;  %112 = vmatprep.subr.bf16.mxu0 %v150_v1  ;;  %v124_v3 = vld [vmem:[%s197_s1 + $0x8] sm:$0xff]   ;;  %v125_v5 = vld [vmem:[%s196_s0] sm:$0xff]   ;;  %s152_s15 = smov [#allocation2]  }
   0x5   :  { %v42_v4 = vsel %vm34_vm0, %v124_v3, 0  ;;  %s92_s16 = sshll.u32 %s152_s15, 4  ;;  %s93_s16 = int_to_ptr.vmem [resolvable:$true] %s92_s16 }
   0x6   :  { %s126_s1 = scalar_lea.vmem %s93_s16, 256  ;;  %p131_p1 = scmp.lt.s32.totalorder %s93_s16, %s93_s16 }
   0x7   :  { %p127_p0 = scmp.ne.s32.totalorder %s93_s16, %s126_s1  ;;  %p132_p2 = scmp.lt.s32.totalorder %s126_s1, %s126_s1 }
   0x9   :  { %p133_p3 = por %p132_p2, %p131_p1 }
   0xb   :  { %113 = vmatpush3.bf16.xpose.msra.mxu0 %v42_v4  ;;  %p134_p4 = pnand %p133_p3, %p127_p0 }
  0x12   :  { %115 = vmatmul.mubr.msk.bf16.vlgmr.msra.gmra.mrb[0].mxu0 %vm34_vm0, %v125_v5 }
  0xe5   :  { %v78_v6 = vpop.f32.mrb[0].mxu0 }
  0xe6   :  { %85 = vst.msk [vmem:[#allocation2] sm:$0xff] %vm34_vm0, %v78_v6  ;;  %v116_v7 = vpop.f32.mrb[1].mxu0 }
  0xe7   :  { %v81_v8 = vpop.f32.mrb[2].mxu0 }
  0xe8   :  { %86 = vst.msk [vmem:[#allocation2 + $0x8] sm:$0xff] %vm34_vm0, %v81_v8  ;;  %v117_v9 = vpop.f32.mrb[3].mxu0 }
  0xe9   :  { %137 = shalt.err (!%p134_p4)
}
  0xea   :  { %s138_s18 = scalar_lea.hbm %s198_s2, 256 }
  0xeb   :  { %p139_p5 = scmp.ne.s32.totalorder %s198_s2, %s138_s18  ;;  %p142_p6 = scmp.lt.u32.totalorder %s138_s18, %s198_s2 }
  0xed   :  { %p144_p7 = pnand %p142_p6, %p139_p5 }
  0xef   :  { %147 = shalt.err (!%p144_p7)
}
  0xf0   :  { %s153_s23 = smov 128   ;;  %s154_s24 = smov 8  }
  0xf1   :  { %98 = dma.vmem_to_hbm [thread:$0]  %s93_s16, 256, %s198_s2, [#allocation3], %s153_s23, %s153_s23, %s154_s24  }
  0xf2   :  { %148 = dma.done.wait [#allocation3], 256  }
  0xf3   :  { %149 = vsyncadd [#allocation3], 4294967040 }
  0xf4   :  { %102 = vsyncpa [#allocation3], 1 }

</bundles_post_ra>
